<compile_context>
chip_gen: v6e
topology: v6e:2x2x1
jax: 0.10.0
libtpu: 0.0.40
codegen_flags: <defaults>
</compile_context>

<pallas_src>
import functools
import math

import jax
import jax.numpy as jnp
from jax.experimental import pallas as pl
from jax.experimental.pallas import tpu as pltpu


def _gm_loss_kernel(x_ref, out_ref, *, k, d, batch_size):
    # Single packed block: (TB, 3K + D) = [loc | scale | weights | utilities]
    x = x_ref[...].astype(jnp.float32)
    loc = x[:, 0:k]                                   # (TB, K)
    scale = x[:, k:2 * k]                             # (TB, K)
    w = x[:, 2 * k:3 * k]                             # (TB, K)
    u = x[:, 3 * k:3 * k + d]                         # (TB, D)

    tb = x.shape[0]

    # Row-validity mask for the (possibly padded) last batch block.
    row = jax.lax.broadcasted_iota(jnp.int32, (tb, 1), 0)        # (TB, 1)
    valid = (pl.program_id(0) * tb + row) < batch_size           # (TB, 1)

    # Sanitize padded rows so garbage scale never produces log(<=0)/div-by-0.
    scale = jnp.where(valid, scale, 1.0)

    # sum_d (u[b,d] - loc[b,k])^2 without materializing (TB, K, D), using the
    # true centered (two-pass) form -- numerically stable even when
    # |mean(u)| >> std(u):
    #   mu = mean_d u ;  ss = sum_d (u - mu)^2 ;  sq_dist = ss + D*(mu-loc)^2
    mu = jnp.sum(u, axis=-1, keepdims=True) / d                  # (TB, 1)
    uc = u - mu                                                  # (TB, D)
    ss = jnp.sum(uc * uc, axis=-1, keepdims=True)                # (TB, 1)
    dmu = mu - loc                                               # (TB, K)
    sq_dist = jnp.maximum(ss + d * dmu * dmu, 0.0)               # (TB, K)

    # inv_var via exp(-2 log s): log/exp go to the EUP slot (free-ish here)
    # and reuse log_scale needed for the log-prob anyway.
    log_scale = jnp.log(scale)                                   # (TB, K)
    inv_var = jnp.exp(-2.0 * log_scale)                          # (TB, K)

    # NOTE: the constant -0.5*D*log(2*pi) is hoisted to the wrapper.
    log_prob_x = -0.5 * sq_dist * inv_var - d * log_scale        # (TB, K)

    # log_softmax over mixture logits.
    w_max = jnp.max(w, axis=-1, keepdims=True)
    lse_w = jnp.log(jnp.sum(jnp.exp(w - w_max), axis=-1, keepdims=True)) + w_max
    log_mix = w - lse_w                                          # (TB, K)

    # logsumexp over components.
    s = log_prob_x + log_mix                                     # (TB, K)
    s_max = jnp.max(s, axis=-1, keepdims=True)
    log_p = jnp.log(jnp.sum(jnp.exp(s - s_max), axis=-1,
                            keepdims=True)) + s_max              # (TB, 1)

    # Mask padded rows BEFORE the cross-row reduction; emit block partial sum.
    log_p = jnp.where(valid, log_p, 0.0)
    out_ref[...] = jnp.sum(log_p, axis=0, keepdims=True)[None]   # (1, 1, 1)


def gaussian_mixture_loss(loc, scale, weights, utilities, *,
                          block_b=8192, input_dtype=None):
    """loc, scale, weights: (B, K); utilities: (B, D). Returns scalar f32.

    block_b: requested batch rows per grid step (auto-capped to a VMEM budget).
    input_dtype: optional narrower dtype (e.g. jnp.bfloat16) for the packed
      HBM stream; in-kernel math is always f32.
    """
    b, k = loc.shape
    d = utilities.shape[-1]

    # Pack into one lane-dense stream: [loc | scale | weights | utilities].
    # (In a real pipeline the producer could emit this layout directly and
    # skip the extra HBM pass of the concatenate.)
    packed = jnp.concatenate([loc, scale, weights, utilities], axis=-1)
    if input_dtype is not None:
        packed = packed.astype(input_dtype)

    itemsize = jnp.dtype(packed.dtype).itemsize
    sub = 32 // itemsize                      # sublane packing: 8 f32, 16 bf16

    # Cap block_b so the double-buffered packed tile stays within ~24 MiB
    # (headroom under the 48 MiB limit below; safe on v7x's 64 MiB VMEM).
    padded_width = -(-packed.shape[-1] // 128) * 128
    bytes_per_row = padded_width * itemsize
    budget = 24 * 1024 * 1024
    max_rows = max(budget // (2 * bytes_per_row), sub)
    block_b = min(block_b, max_rows)

    if b <= block_b:
        block_b = b                           # one block == full array
    else:
        block_b = max((block_b // sub) * sub, sub)
    num_blocks = -(-b // block_b)

    kernel = functools.partial(_gm_loss_kernel, k=k, d=d, batch_size=b)

    partial_sums = pl.pallas_call(
        kernel,
        out_shape=jax.ShapeDtypeStruct((num_blocks, 1, 1), jnp.float32),
        grid_spec=pltpu.PrefetchScalarGridSpec(
            num_scalar_prefetch=0,
            grid=(num_blocks,),
            in_specs=[
                pl.BlockSpec((block_b, packed.shape[-1]), lambda i: (i, 0)),
            ],
            out_specs=pl.BlockSpec((1, 1, 1), lambda i: (i, 0, 0)),
        ),
        compiler_params=pltpu.CompilerParams(
            # Blocks are independent partial sums -> parallel (megacore).
            dimension_semantics=("parallel",),
            vmem_limit_bytes=48 * 1024 * 1024,
        ),
    )(packed)

    # loss = (-mean_b log_p)/D ; hoisted constant re-added here:
    #   log_p_true = log_p_kernel - 0.5*D*log(2*pi)
    half_log_2pi = 0.5 * math.log(2.0 * math.pi)
    return -jnp.sum(partial_sums) / (b * d) + half_log_2pi


def _reference(loc, scale, weights, utilities):
    # Pure-JAX reference mirroring torch.distributions semantics.
    d = utilities.shape[-1]
    diff = utilities[:, None, :] - loc[:, :, None]        # (B, K, D)
    sc = scale[:, :, None]
    comp_lp = jnp.sum(-0.5 * (diff / sc) ** 2 - jnp.log(sc)
                      - 0.5 * jnp.log(2.0 * jnp.pi), axis=-1)        # (B, K)
    log_mix = jax.nn.log_softmax(weights, axis=-1)
    log_p = jax.scipy.special.logsumexp(comp_lp + log_mix, axis=-1)  # (B,)
    return (-jnp.mean(log_p)) / d


if __name__ == "__main__":
    B, K, D = 20, 16, 32   # B deliberately NOT a multiple of the small tile
    key = jax.random.PRNGKey(0)
    k1, k2, k3, k4 = jax.random.split(key, 4)

    loc = jax.random.normal(k1, (B, K), dtype=jnp.float32)
    scale = jax.nn.softplus(jax.random.normal(k2, (B, K), dtype=jnp.float32)) + 0.1
    weights = jax.random.normal(k3, (B, K), dtype=jnp.float32)
    utilities = jax.random.normal(k4, (B, D), dtype=jnp.float32)

    ref = _reference(loc, scale, weights, utilities)

    # Multi-block path (grid of 3, last block partially padded -> masked).
    loss_tiled = gaussian_mixture_loss(loc, scale, weights, utilities, block_b=8)
    jax.block_until_ready(loss_tiled)
    assert jnp.allclose(loss_tiled, ref, rtol=1e-4, atol=1e-4), (loss_tiled, ref)

    # Default (single-block) path, f32.
    loss_full = gaussian_mixture_loss(loc, scale, weights, utilities)
    jax.block_until_ready(loss_full)
    assert jnp.allclose(loss_full, ref, rtol=1e-4, atol=1e-4), (loss_full, ref)

    # bf16 HBM stream (compute stays f32) -- looser tolerance for input quant.
    loss_bf16 = gaussian_mixture_loss(loc, scale, weights, utilities,
                                      block_b=8, input_dtype=jnp.bfloat16)
    jax.block_until_ready(loss_bf16)
    assert jnp.allclose(loss_bf16, ref, rtol=5e-2, atol=5e-2), (loss_bf16, ref)

    print("KERNEL_OK")
</pallas_src>

<mosaic_0001>
module attributes {stable_mosaic.version = 11 : i64} {
  func.func @_gm_loss_kernel(%arg0: i32, %arg1: memref<8x80xf32, #tpu.memory_space<vmem>>, %arg2: memref<1x1x1xf32, #tpu.memory_space<vmem>>) attributes {dimension_semantics = [#tpu.dimension_semantics<parallel>], iteration_bounds = array<i64: 3>, scalar_prefetch = 0 : i64, scratch_operands = 0 : i64, tpu.core_type = #tpu.core_type<tc>, window_params = [{transform_indices = @transform_0, window_bounds = array<i64: 8, 80>}, {transform_indices = @transform_1, window_bounds = array<i64: 1, 1, 1>}]} {
    %c0 = arith.constant 0 : index
    %c0_0 = arith.constant 0 : index
    %0 = vector.load %arg1[%c0, %c0_0] : memref<8x80xf32, #tpu.memory_space<vmem>>, vector<8x80xf32>
    %1 = vector.extract_strided_slice %0 {offsets = [0, 0], sizes = [8, 16], strides = [1, 1]} : vector<8x80xf32> to vector<8x16xf32>
    %2 = vector.extract_strided_slice %0 {offsets = [0, 16], sizes = [8, 16], strides = [1, 1]} : vector<8x80xf32> to vector<8x16xf32>
    %3 = vector.extract_strided_slice %0 {offsets = [0, 32], sizes = [8, 16], strides = [1, 1]} : vector<8x80xf32> to vector<8x16xf32>
    %4 = vector.extract_strided_slice %0 {offsets = [0, 48], sizes = [8, 32], strides = [1, 1]} : vector<8x80xf32> to vector<8x32xf32>
    %5 = tpu.iota {dimensions = array<i32: 0>} : vector<8x1xi32>
    %c8_i32 = arith.constant 8 : i32
    %6 = arith.muli %arg0, %c8_i32 : i32
    %7 = vector.broadcast %6 : i32 to vector<8x1xi32>
    %8 = arith.addi %7, %5 : vector<8x1xi32>
    %c20_i32 = arith.constant 20 : i32
    %9 = vector.broadcast %c20_i32 : i32 to vector<8x1xi32>
    %10 = arith.cmpi slt, %8, %9 : vector<8x1xi32>
    %cst = arith.constant 1.000000e+00 : f32
    %11 = vector.shape_cast %10 : vector<8x1xi1> to vector<8x1xi1>
    %12 = vector.broadcast %11 : vector<8x1xi1> to vector<8x16xi1>
    %13 = vector.broadcast %cst : f32 to vector<8x16xf32>
    %14 = arith.select %12, %2, %13 : vector<8x16xi1>, vector<8x16xf32>
    %cst_1 = arith.constant dense<0.000000e+00> : vector<8xf32>
    %15 = vector.multi_reduction <add>, %4, %cst_1 [1] : vector<8x32xf32> to vector<8xf32>
    %16 = vector.shape_cast %15 : vector<8xf32> to vector<8x1xf32>
    %cst_2 = arith.constant 3.200000e+01 : f32
    %17 = vector.broadcast %cst_2 : f32 to vector<8x1xf32>
    %18 = arith.divf %16, %17 : vector<8x1xf32>
    %19 = vector.broadcast %18 : vector<8x1xf32> to vector<8x32xf32>
    %20 = arith.subf %4, %19 : vector<8x32xf32>
    %21 = arith.mulf %20, %20 : vector<8x32xf32>
    %cst_3 = arith.constant dense<0.000000e+00> : vector<8xf32>
    %22 = vector.multi_reduction <add>, %21, %cst_3 [1] : vector<8x32xf32> to vector<8xf32>
    %23 = vector.shape_cast %22 : vector<8xf32> to vector<8x1xf32>
    %24 = vector.broadcast %18 : vector<8x1xf32> to vector<8x16xf32>
    %25 = arith.subf %24, %1 : vector<8x16xf32>
    %cst_4 = arith.constant 3.200000e+01 : f32
    %26 = vector.broadcast %cst_4 : f32 to vector<8x16xf32>
    %27 = arith.mulf %26, %25 : vector<8x16xf32>
    %28 = arith.mulf %27, %25 : vector<8x16xf32>
    %29 = vector.broadcast %23 : vector<8x1xf32> to vector<8x16xf32>
    %30 = arith.addf %29, %28 : vector<8x16xf32>
    %cst_5 = arith.constant 0.000000e+00 : f32
    %31 = vector.broadcast %cst_5 : f32 to vector<8x16xf32>
    %32 = arith.maximumf %30, %31 : vector<8x16xf32>
    %33 = math.log %14 : vector<8x16xf32>
    %cst_6 = arith.constant -2.000000e+00 : f32
    %34 = vector.broadcast %cst_6 : f32 to vector<8x16xf32>
    %35 = arith.mulf %34, %33 : vector<8x16xf32>
    %36 = math.exp %35 : vector<8x16xf32>
    %cst_7 = arith.constant -5.000000e-01 : f32
    %37 = vector.broadcast %cst_7 : f32 to vector<8x16xf32>
    %38 = arith.mulf %37, %32 : vector<8x16xf32>
    %39 = arith.mulf %38, %36 : vector<8x16xf32>
    %cst_8 = arith.constant 3.200000e+01 : f32
    %40 = vector.broadcast %cst_8 : f32 to vector<8x16xf32>
    %41 = arith.mulf %40, %33 : vector<8x16xf32>
    %42 = arith.subf %39, %41 : vector<8x16xf32>
    %cst_9 = arith.constant dense<0xFF800000> : vector<8xf32>
    %43 = vector.multi_reduction <maximumf>, %3, %cst_9 [1] : vector<8x16xf32> to vector<8xf32>
    %44 = vector.shape_cast %43 : vector<8xf32> to vector<8x1xf32>
    %45 = vector.broadcast %44 : vector<8x1xf32> to vector<8x16xf32>
    %46 = arith.subf %3, %45 : vector<8x16xf32>
    %47 = math.exp %46 : vector<8x16xf32>
    %cst_10 = arith.constant dense<0.000000e+00> : vector<8xf32>
    %48 = vector.multi_reduction <add>, %47, %cst_10 [1] : vector<8x16xf32> to vector<8xf32>
    %49 = vector.shape_cast %48 : vector<8xf32> to vector<8x1xf32>
    %50 = math.log %49 : vector<8x1xf32>
    %51 = arith.addf %50, %44 : vector<8x1xf32>
    %52 = vector.broadcast %51 : vector<8x1xf32> to vector<8x16xf32>
    %53 = arith.subf %3, %52 : vector<8x16xf32>
    %54 = arith.addf %42, %53 : vector<8x16xf32>
    %cst_11 = arith.constant dense<0xFF800000> : vector<8xf32>
    %55 = vector.multi_reduction <maximumf>, %54, %cst_11 [1] : vector<8x16xf32> to vector<8xf32>
    %56 = vector.shape_cast %55 : vector<8xf32> to vector<8x1xf32>
    %57 = vector.broadcast %56 : vector<8x1xf32> to vector<8x16xf32>
    %58 = arith.subf %54, %57 : vector<8x16xf32>
    %59 = math.exp %58 : vector<8x16xf32>
    %cst_12 = arith.constant dense<0.000000e+00> : vector<8xf32>
    %60 = vector.multi_reduction <add>, %59, %cst_12 [1] : vector<8x16xf32> to vector<8xf32>
    %61 = vector.shape_cast %60 : vector<8xf32> to vector<8x1xf32>
    %62 = math.log %61 : vector<8x1xf32>
    %63 = arith.addf %62, %56 : vector<8x1xf32>
    %cst_13 = arith.constant 0.000000e+00 : f32
    %64 = vector.broadcast %cst_13 : f32 to vector<8x1xf32>
    %65 = arith.select %10, %63, %64 : vector<8x1xi1>, vector<8x1xf32>
    %cst_14 = arith.constant dense<0.000000e+00> : vector<1xf32>
    %66 = vector.multi_reduction <add>, %65, %cst_14 [0] : vector<8x1xf32> to vector<1xf32>
    %67 = vector.shape_cast %66 : vector<1xf32> to vector<1x1xf32>
    %68 = vector.shape_cast %67 : vector<1x1xf32> to vector<1x1x1xf32>
    %c0_15 = arith.constant 0 : index
    %c0_16 = arith.constant 0 : index
    %c0_17 = arith.constant 0 : index
    %69 = vector.load %arg2[%c0_15, %c0_16, %c0_17] : memref<1x1x1xf32, #tpu.memory_space<vmem>>, vector<1x1x1xf32>
    tpu.vector_store %arg2[%c0_15, %c0_16, %c0_17], %68 {strides = array<i32>} : memref<1x1x1xf32, #tpu.memory_space<vmem>>, vector<1x1x1xf32>,
    return
  }
  func.func @transform_0(%arg0: i32) -> (i32, i32) {
    %c0_i32 = arith.constant 0 : i32
    %c0_i32_0 = arith.constant 0 : i32
    return %arg0, %c0_i32 : i32, i32
  }
  func.func @transform_1(%arg0: i32) -> (i32, i32, i32) {
    %c0_i32 = arith.constant 0 : i32
    %c0_i32_0 = arith.constant 0 : i32
    %c0_i32_1 = arith.constant 0 : i32
    return %arg0, %c0_i32, %c0_i32_0 : i32, i32, i32
  }
}

</mosaic_0001>

<bundles_post_ra>
// kernel: tpu_custom_call.1
= control target key start
LH: loop header
LB: loop body
LE: loop exit
PB: predicated region body
PF: predicated region fallthrough
CT: control target
= control target key end

     0   :  { %6 = vsyncpa [#allocation3], 0  ;;  %s539_s0 = inlined_call_operand.hbm [shape: f32[20,80], index: 0, kind: input, shape index: {}]   ;;  %s540_s1 = inlined_call_operand.vmem [shape: f32[3,1,1], index: 1, kind: output, shape index: {}]  }
   0x1   :  { %8 = vsyncpa [#allocation3 + $0x1], 0  ;;  %s427_s6 = smov 0   ;;  %s429_s7 = smov 0  }
   0x2   :  { %s431_s8 = smov 0   ;;  %s433_s9 = smov 0  }
   0x3 LB: > { %s446_s10 = sadd.s32 4294967295, %s411_s9   ;;  %s449_s11 = sadd.s32 1, %s411_s9   ;;  %s411_s9 = sphi %s433_s9, %s550_s9   ;;  %s407_s8 = sphi %s431_s8, %s549_s8   ;;  %s403_s7 = sphi %s429_s7, %s548_s7   ;;  %s399_s6 = sphi %s427_s6, %s547_s6  }
   0x4   : > { %s18_s12 = ssub.s32 %s411_s9, %s449_s11  ;;  %s21_s13 = sadd.s32 1, %s407_s8 }
   0x5   : > { %p19_p0 = scmp.eq.s32.totalorder %s18_s12, 0  ;;  %p28_p1 = scmp.ne.s32.totalorder %s407_s8, %s403_s7 }
   0x6   : > { %p29_p2 = scmp.eq.s32.totalorder %s411_s9, 0  ;;  %p34_p3 = scmp.ne.s32.totalorder %s403_s7, %s399_s6 }
   0x7   : > { %s459_s14 = scalar_select %p19_p0, %s407_s8, %s21_s13  }
   0x8   : > { %p30_p4 = por %p29_p2, %p28_p1  ;;  %p35_p5 = scmp.eq.s32.totalorder %s446_s10, 0 }
   0x9   : > { %p301_p6 = scmp.lt.s32.totalorder %s411_s9, 3  ;;  %s84_s16 = sand.u32 1, %s407_s8  }
   0xa   : > { %p463_p7 = por %p35_p5, %p34_p3  ;;  %s288_s17 = sshll.u32 %s84_s16, 3 }
   0xb   : > { %s289_s18 = sshll.u32 %s411_s9, 7  ;;  %s88_s22 = scalar_lea.vmem [#allocation2], %s288_s17 }
   0xc   : > { %s542_s15 = scalar_select %p463_p7, 1, 0 }
   0xd   : > { %s472_s21 = scalar_lea.hbm %s539_s0, %s289_s18  ;;  %s95_s23 = sshll.u32 %s88_s22, 4  ;;  %s474_s23 = int_to_ptr.vmem [resolvable:$true] %s95_s23 }
   0xe   : > { %p476_p8 = pnand %p301_p6, %p30_p4  ;;  %s85_s25 = scalar_lea.sflag [#allocation3], %s84_s16 }
   0xf   : > { %s349_s26 = scalar_lea.hbm %s472_s21, 128  ;;  %s354_s29 = scalar_lea.hbm %s539_s0, 384 }
  0x10   : > { %p350_p11 = scmp.ne.s32.totalorder %s472_s21, %s349_s26  ;;  %p351_p12 = pneg %p476_p8 }
  0x11   : > { %p355_p1 = scmp.lt.s32.totalorder %s472_s21, %s539_s0  ;;  %p356_p2 = scmp.lt.s32.totalorder %s354_s29, %s349_s26 }
  0x12   : > { %p352_p13 = pnand %p351_p12, %p350_p11 }
  0x13   : > { %p357_p3 = por %p356_p2, %p355_p1 }
  0x14   : > { %p353_p0 = pneg %p352_p13 }
  0x16   : > { %p358_p4 = pnand %p357_p3, %p353_p0 }
  0x18   : > { %361 = shalt.err (!%p358_p4)
}
  0x19   : > { %s362_s3 = scalar_lea.vmem %s474_s23, 128  ;;  %s413_s4 = smov [#allocation2]  }
  0x1a   : > { %p363_p5 = scmp.ne.s32.totalorder %s474_s23, %s362_s3  ;;  %s367_s5 = sshll.u32 %s413_s4, 4  ;;  %s368_s5 = int_to_ptr.vmem [resolvable:$false] %s367_s5 }
  0x1b   : > { %s369_s6 = scalar_lea.vmem %s368_s5, 256  ;;  %p370_p13 = scmp.lt.s32.totalorder %s474_s23, %s368_s5 }
  0x1c   : > { %p365_p6 = pnand %p363_p5, %p351_p12  ;;  %p371_p9 = scmp.lt.s32.totalorder %s369_s6, %s362_s3 }
  0x1e   : > { %p366_p11 = pneg %p365_p6  ;;  %p372_p10 = por %p371_p9, %p370_p13 }
  0x20   : > { %p373_p7 = pnand %p372_p10, %p366_p11 }
  0x22   : > { %376 = shalt.err (!%p373_p7)
}
  0x23   : > { %300 = dma.hbm_to_vmem [thread:$0]  (!%p476_p8), %s472_s21, 128, %s474_s23, %s85_s25  }
  0x24   : > { %p544_p0 = scmp.lt.s32.totalorder %s411_s9, 4  ;;  %p545_p1 = scmp.ge.s32.totalorder %s411_s9, 1 }
  0x26   : > { %p101_p12 = pnand %p545_p1, %p544_p0 }
  0x27   : > { %s106_s12 = sand.u32 (!%p101_p12), 1, %s403_s7   ;;  %p546_p9 = scmp.ne.s32.totalorder (!%p101_p12), %s542_s15, 0 }
  0x28   : > { %104 = sbr.rel (%p101_p12) target bundleno = 937 (0x3a9), region = 24  ;;  %s291_s13 = sshll.u32 (!%p101_p12), %s106_s12, 3 }
  0x29   : > { %s107_s16 = scalar_lea.sflag (!%p101_p12), [#allocation3], %s106_s12  ;;  %s110_s17 = scalar_lea.vmem (!%p101_p12), [#allocation2], %s291_s13 }
  0x2d   : > { %394 = dma.done.wait (%p546_p9), %s107_s16, 128  }
  0x2e   : > { %396 = vsyncadd (%p546_p9), %s107_s16, 4294967168  ;;  %vm181_vm0 = vcmask 392448   ;;  %v130_v0 = vld [vmem:[%s110_s17] sm:$0xff]  ;;  %s414_s18 = smov 80   ;;  %vm144_vm1 = vcmask 261120   ;;  %s415_s9 = smov 96   ;;  %v131_v8 = vlaneseq }
  0x2f   : > { %v182_v1 = vsel %vm181_vm0, %v130_v0, -inf  ;;  %s292_s15 = sshll.u32 %s446_s10, 3  ;;  %vm192_vm3 = vcmask 130048   ;;  %s416_s19 = smov 112   ;;  %vm224_vm4 = vcmask 0  }
  0x30   : > { %183 = vmax.xlane.f32.xlu0 %v182_v1  ;;  %v132_v9 = vshrl.u32 %v131_v8, 7  ;;  %v134_v10 = vstv %s292_s15  ;;  %p127_p7 = scmp.lt.s32.totalorder %s446_s10, 2 }
  0x32   : > { %v135_v11 = vadd.s32 %v134_v10, %v132_v9  ;;  %s552_s10 = smov (!%p127_p7, %s446_s10), 2 }
  0x33   : > { %s129_s22 = scalar_lea.vmem %s540_s1, %s552_s10 }
  0x34   : > { %vm136_vm2 = vcmp.lt.s32.totalorder %v135_v11, 20 }
  0x35   : > { %v139_v12 = vsel %vm136_vm2, %v130_v0, 1.0 }
  0x46   : > { %141 = vrot.lane.b32.xlu0 %v130_v0, %s414_s18 }
  0xb9   : > { %v184_v2 = vpop.xlane.xlu0 %183 }
  0xba   : > { %v185_v3 = vsub.f32 %v130_v0, %v184_v2 }
  0xbc   : > { %v186_v5 = vmul.f32 1.442695, %v185_v3 }
  0xbd   : > { %v142_v4 = vpop.permute.xlu0 %141 }
  0xbe   : > { %v145_v6 = vsel %vm144_vm1, %v142_v4, 0.0  ;;  %337 = vpow2.f32 %v186_v5 }
  0xbf   : > { %146 = vadd.xlane.f32.xlu1 %v145_v6  ;;  %339 = vlog2.f32 %v139_v12 }
  0xcb   : > { %v338_v7 = vpop.eup %337 }
  0xcc   : > { %v340_v13 = vpop.eup %339 }
  0xcd   : > { %v165_v14 = vmul.f32 0.6931472, %v340_v13 }
  0xcf   : > { %v166_v15 = vmul.f32 -2.0, %v165_v14  ;;  %v175_v26 = vmul.f32 32.0, %v165_v14 }
  0xd0   : > { %189 = vrot.lane.b32.xlu1 %v338_v7, %s415_s9 }
  0xd1   : > { %v167_v19 = vmul.f32 1.442695, %v166_v15 }
  0xd3   : > { %341 = vpow2.f32 %v167_v19 }
  0xe0   : > { %v342_v23 = vpop.eup %341 }
 0x148   : > { %v147_v16 = vpop.xlane.xlu1 %146 }
 0x149   : > { %v149_v17 = vmul.f32 0.03125, %v147_v16 }
 0x14b   : > { %v150_v18 = vsub.f32 %v130_v0, %v149_v17  ;;  %v159_v32 = vsub.f32 %v149_v17, %v130_v0 }
 0x14c   : > { %v190_v20 = vpop.permute.xlu1 %189 }
 0x14d   : > { %v151_v21 = vmul.f32 %v150_v18, %v150_v18  ;;  %v193_v22 = vsel %vm192_vm3, %v190_v20, 0.0  ;;  %v160_v33 = vmul.f32 32.0, %v159_v32 }
 0x14e   : > { %194 = vadd.xlane.f32.xlu1 %v193_v22 }
 0x14f   : > { %153 = vrot.lane.b32.xlu0 %v151_v21, %s414_s18  ;;  %v161_v34 = vmul.f32 %v160_v33, %v159_v32 }
 0x15f   : > { %171 = vrot.lane.b32.xlu1 %v342_v23, %s416_s19 }
 0x1c1   : > { %v154_v24 = vpop.permute.xlu0 %153 }
 0x1c2   : > { %v156_v25 = vsel %vm144_vm1, %v154_v24, 0.0 }
 0x1c3   : > { %157 = vadd.xlane.f32.xlu0 %v156_v25 }
 0x1d7   : > { %v195_v27 = vpop.xlane.xlu1 %194 }
 0x1d8   : > { %343 = vlog2.f32 %v195_v27 }
 0x1d9   : > { %177 = vrot.lane.b32.xlu0 %v175_v26, %s416_s19 }
 0x1db   : > { %v172_v39 = vpop.permute.xlu1 %171 }
 0x1e5   : > { %v344_v28 = vpop.eup %343 }
 0x1e6   : > { %v197_v29 = vmul.f32 0.6931472, %v344_v28 }
 0x1e8   : > { %v198_v30 = vadd.f32 %v197_v29, %v184_v2 }
 0x1ea   : > { %v199_v31 = vsub.f32 %v130_v0, %v198_v30 }
 0x1ec   : > { %201 = vrot.lane.b32.xlu1 %v199_v31, %s415_s9 }
 0x24c   : > { %v158_v35 = vpop.xlane.xlu0 %157 }
 0x24d   : > { %v162_v36 = vadd.f32 %v161_v34, %v158_v35 }
 0x24f   : > { %v163_v37 = vmax.f32 %v162_v36, 0.0 }
 0x250   : > { %v178_v41 = vpop.permute.xlu0 %177 }
 0x251   : > { %v169_v38 = vmul.f32 -0.5, %v163_v37 }
 0x253   : > { %v174_v40 = vmul.f32 %v172_v39, %v169_v38 }
 0x255   : > { %v180_v42 = vsub.f32 %v174_v40, %v178_v41 }
 0x25e   : > { %v202_v43 = vpop.permute.xlu1 %201 }
 0x25f   : > { %v204_v44 = vadd.f32 %v202_v43, %v180_v42 }
 0x261   : > { %v205_v45 = vsel %vm192_vm3, %v204_v44, -inf }
 0x262   : > { %206 = vmax.xlane.f32.xlu1 %v205_v45 }
 0x2eb   : > { %v207_v46 = vpop.xlane.xlu1 %206 }
 0x2ec   : > { %v208_v47 = vsub.f32 %v204_v44, %v207_v46 }
 0x2ee   : > { %v209_v48 = vmul.f32 1.442695, %v208_v47 }
 0x2f0   : > { %345 = vpow2.f32 %v209_v48 }
 0x2fd   : > { %v346_v49 = vpop.eup %345 }
 0x2fe   : > { %v211_v50 = vsel %vm192_vm3, %v346_v49, 0.0 }
 0x2ff   : > { %212 = vadd.xlane.f32.xlu0 %v211_v50 }
 0x388   : > { %v213_v51 = vpop.xlane.xlu0 %212 }
 0x389   : > { %347 = vlog2.f32 %v213_v51 }
 0x396   : > { %v348_v52 = vpop.eup %347 }
 0x397   : > { %v215_v53 = vmul.f32 0.6931472, %v348_v52 }
 0x399   : > { %v216_v54 = vadd.f32 %v215_v53, %v207_v46 }
 0x39b   : > { %v217_v55 = vsel %vm136_vm2, %v216_v54, 0.0 }
 0x39c   : > { %v218_v56 = vrot.slane %v217_v55, 4 }
 0x39e   : > { %v219_v57 = vadd.f32 %v218_v56, %v217_v55 }
 0x3a0   : > { %v220_v58 = vrot.slane %v219_v57, 2 }
 0x3a2   : > { %v221_v59 = vadd.f32 %v220_v58, %v219_v57 }
 0x3a4   : > { %v222_v60 = vrot.slane %v221_v59, 1 }
 0x3a6   : > { %v223_v61 = vadd.f32 %v222_v60, %v221_v59 }
 0x3a8   : > { %225 = vst.msk [vmem:[%s129_s22] sm:$0x1] %vm224_vm4, %v223_v61 }
 0x3a9 PF: > { %p11_p8 = scmp.ge.s32.totalorder %s449_s11, 5   ;;  %s547_s6 = smov %s403_s7 }
 0x3aa   : > { %s548_s7 = smov %s407_s8  ;;  %s549_s8 = smov %s459_s14 }
 0x3ab   : > { %s550_s9 = smov %s449_s11  ;;  %13 = sbr.rel (!%p11_p8) target bundleno = 3 (0x3), region = 64 }
 0x3b0   :  { %243 = vsyncpa [#allocation3], 1 }
 0x3b1   :  { %245 = vsyncpa [#allocation3 + $0x1], 1 }

</bundles_post_ra>
